<compile_context>
chip_gen: v5e
topology: v5e:2x2
jax: 0.10.0
libtpu: 0.0.40
codegen_flags: <defaults>
</compile_context>

<pallas_src>
import jax
import jax.numpy as jnp
from jax.experimental import pallas as pl
from jax.experimental.pallas import tpu as pltpu


def _rope_kernel(pos_ref, inv_ref, cos_ref, sin_ref):
    # pos_ref: (TS, 1) f32    -- positions, sublane-major
    # inv_ref: (1, dim) f32   -- duplicated inverse frequencies (resident)
    # cos_ref/sin_ref: (TS, dim) in the output dtype
    freqs = pos_ref[...] * inv_ref[...]                   # (TS, dim) f32, VPU broadcast
    cos_ref[...] = jnp.cos(freqs).astype(cos_ref.dtype)   # one contiguous store
    sin_ref[...] = jnp.sin(freqs).astype(sin_ref.dtype)   # one contiguous store


def _round_up(n: int, m: int) -> int:
    return ((n + m - 1) // m) * m


def _choose_tile(n: int):
    """Pick a sequence tile (multiple of 8, capped at 512) and padded length."""
    if n <= 8:
        return 8, 8
    ts = min(512, _round_up(n, 8))
    if _round_up(n, ts) // ts < 2:
        # Aim for >= 2 grid steps so both v7x TensorCores can be used.
        ts = _round_up((n + 1) // 2, 8)
    return ts, _round_up(n, ts)


def phi3_rotary_embedding(x, position_ids, dim, base=10000.0):
    """Returns (cos, sin), each of shape (B, S, dim) and dtype x.dtype."""
    B, S = position_ids.shape
    N = B * S
    TS, N_pad = _choose_tile(N)

    # Parameter-free module: inv_freq derived deterministically (JAX glue).
    inv_freq = 1.0 / (base ** (jnp.arange(0, dim, 2, dtype=jnp.float32) / dim))
    # Pre-duplicate so the kernel does one full-width multiply + one store per
    # output (emb = concat(freqs, freqs) == pos * concat(inv, inv)).
    inv_dup = jnp.concatenate([inv_freq, inv_freq]).reshape(1, dim)

    # Note: f32 positions are exact only up to 2^24; fine for realistic contexts.
    pos = position_ids.reshape(N).astype(jnp.float32)
    if N_pad != N:
        pos = jnp.pad(pos, (0, N_pad - N))
    pos = pos.reshape(N_pad, 1)  # sublane-major layout for the kernel tile

    out_dtype = x.dtype
    cos_flat, sin_flat = pl.pallas_call(
        _rope_kernel,
        out_shape=(
            jax.ShapeDtypeStruct((N_pad, dim), out_dtype),
            jax.ShapeDtypeStruct((N_pad, dim), out_dtype),
        ),
        grid_spec=pltpu.PrefetchScalarGridSpec(
            num_scalar_prefetch=0,
            grid=(N_pad // TS,),
            in_specs=[
                pl.BlockSpec((TS, 1), lambda i: (i, 0)),    # positions tile
                pl.BlockSpec((1, dim), lambda i: (0, 0)),   # inv_freq (resident)
            ],
            out_specs=[
                pl.BlockSpec((TS, dim), lambda i: (i, 0)),
                pl.BlockSpec((TS, dim), lambda i: (i, 0)),
            ],
        ),
        compiler_params=pltpu.CompilerParams(
            dimension_semantics=("parallel",),
            vmem_limit_bytes=8 * 1024 * 1024,
        ),
    )(pos, inv_dup)

    cos = cos_flat[:N].reshape(B, S, dim)
    sin = sin_flat[:N].reshape(B, S, dim)
    return cos, sin


if __name__ == "__main__":
    key = jax.random.PRNGKey(0)
    B, S, dim = 2, 8, 32

    # x is only consulted for dtype/device in the reference module.
    x = jax.random.normal(key, (B, S, dim), dtype=jnp.float32)
    position_ids = jnp.broadcast_to(jnp.arange(S, dtype=jnp.int32)[None, :], (B, S))

    cos, sin = phi3_rotary_embedding(x, position_ids, dim)
    jax.block_until_ready((cos, sin))

    # Pure-JAX reference check.
    inv_freq = 1.0 / (10000.0 ** (jnp.arange(0, dim, 2, dtype=jnp.float32) / dim))
    freqs = position_ids.astype(jnp.float32)[:, :, None] * inv_freq[None, None, :]
    emb = jnp.concatenate([freqs, freqs], axis=-1)
    assert cos.shape == (B, S, dim) and sin.shape == (B, S, dim)
    assert cos.dtype == x.dtype and sin.dtype == x.dtype
    assert jnp.allclose(cos, jnp.cos(emb).astype(x.dtype), atol=1e-5)
    assert jnp.allclose(sin, jnp.sin(emb).astype(x.dtype), atol=1e-5)

    print("KERNEL_OK")
</pallas_src>

<mosaic_0001>
module attributes {stable_mosaic.version = 11 : i64} {
  func.func @_rope_kernel(%arg0: i32, %arg1: memref<8x1xf32, #tpu.memory_space<vmem>>, %arg2: memref<1x32xf32, #tpu.memory_space<vmem>>, %arg3: memref<8x32xf32, #tpu.memory_space<vmem>>, %arg4: memref<8x32xf32, #tpu.memory_space<vmem>>) attributes {dimension_semantics = [#tpu.dimension_semantics<parallel>], iteration_bounds = array<i64: 2>, scalar_prefetch = 0 : i64, scratch_operands = 0 : i64, tpu.core_type = #tpu.core_type<tc>, window_params = [{transform_indices = @transform_0, window_bounds = array<i64: 8, 1>}, {pipeline_mode = #tpu.pipeline_mode<synchronous>, transform_indices = @transform_1, window_bounds = array<i64: 1, 32>}, {transform_indices = @transform_2, window_bounds = array<i64: 8, 32>}, {transform_indices = @transform_3, window_bounds = array<i64: 8, 32>}]} {
    %c0 = arith.constant 0 : index
    %c0_0 = arith.constant 0 : index
    %0 = vector.load %arg1[%c0, %c0_0] : memref<8x1xf32, #tpu.memory_space<vmem>>, vector<8x1xf32>
    %c0_1 = arith.constant 0 : index
    %c0_2 = arith.constant 0 : index
    %1 = vector.load %arg2[%c0_1, %c0_2] : memref<1x32xf32, #tpu.memory_space<vmem>>, vector<1x32xf32>
    %2 = vector.broadcast %0 : vector<8x1xf32> to vector<8x32xf32>
    %3 = vector.broadcast %1 : vector<1x32xf32> to vector<8x32xf32>
    %4 = arith.mulf %2, %3 : vector<8x32xf32>
    %5 = math.cos %4 : vector<8x32xf32>
    %c0_3 = arith.constant 0 : index
    %c0_4 = arith.constant 0 : index
    %6 = vector.load %arg3[%c0_3, %c0_4] : memref<8x32xf32, #tpu.memory_space<vmem>>, vector<8x32xf32>
    tpu.vector_store %arg3[%c0_3, %c0_4], %5 {strides = array<i32>} : memref<8x32xf32, #tpu.memory_space<vmem>>, vector<8x32xf32>,
    %7 = math.sin %4 : vector<8x32xf32>
    %c0_5 = arith.constant 0 : index
    %c0_6 = arith.constant 0 : index
    %8 = vector.load %arg4[%c0_5, %c0_6] : memref<8x32xf32, #tpu.memory_space<vmem>>, vector<8x32xf32>
    tpu.vector_store %arg4[%c0_5, %c0_6], %7 {strides = array<i32>} : memref<8x32xf32, #tpu.memory_space<vmem>>, vector<8x32xf32>,
    return
  }
  func.func @transform_0(%arg0: i32) -> (i32, i32) {
    %c0_i32 = arith.constant 0 : i32
    %c0_i32_0 = arith.constant 0 : i32
    return %arg0, %c0_i32 : i32, i32
  }
  func.func @transform_1(%arg0: i32) -> (i32, i32) {
    %c0_i32 = arith.constant 0 : i32
    %c0_i32_0 = arith.constant 0 : i32
    %c0_i32_1 = arith.constant 0 : i32
    return %c0_i32, %c0_i32_0 : i32, i32
  }
  func.func @transform_2(%arg0: i32) -> (i32, i32) {
    %c0_i32 = arith.constant 0 : i32
    %c0_i32_0 = arith.constant 0 : i32
    return %arg0, %c0_i32 : i32, i32
  }
  func.func @transform_3(%arg0: i32) -> (i32, i32) {
    %c0_i32 = arith.constant 0 : i32
    %c0_i32_0 = arith.constant 0 : i32
    return %arg0, %c0_i32 : i32, i32
  }
}

</mosaic_0001>

<bundles_post_ra>
// kernel: tpu_custom_call.1
= control target key start
LH: loop header
LB: loop body
LE: loop exit
PB: predicated region body
PF: predicated region fallthrough
CT: control target
= control target key end

     0   :  { %9 = vsyncpa [#allocation3], 0  ;;  %s1003_s0 = inlined_call_operand.vmem [shape: f32[16,1], index: 0, kind: input, shape index: {}]   ;;  %s1004_s1 = inlined_call_operand.vmem [shape: f32[1,32], index: 1, kind: input, shape index: {}]   ;;  %s1005_s2 = inlined_call_operand.hbm [shape: f32[16,32], index: 2, kind: output, shape index: {0}]   ;;  %s1006_s3 = inlined_call_operand.hbm [shape: f32[16,32], index: 3, kind: output, shape index: {1}]  }
   0x1   :  { %11 = vsyncpa [#allocation3 + $0x1], 0 }
   0x2   :  { %12 = vsyncpa [#allocation5], 0 }
   0x3   :  { %14 = vsyncpa [#allocation5 + $0x1], 0  ;;  %s822_s12 = smov 0   ;;  %s824_s13 = smov 0  }
   0x4   :  { %s826_s14 = smov 0   ;;  %s828_s15 = smov 0  }
   0x5 LB: > { %s843_s16 = sadd.s32 4294967295, %s793_s15   ;;  %s627_s17 = sadd.s32 4294967294, %s793_s15   ;;  %s793_s15 = sphi %s828_s15, %s1012_s15   ;;  %s789_s14 = sphi %s826_s14, %s1011_s14   ;;  %s785_s13 = sphi %s824_s13, %s1010_s13   ;;  %s781_s12 = sphi %s822_s12, %s1009_s12  }
   0x6   : > { %s847_s18 = sadd.s32 1, %s793_s15   ;;  %s74_s19 = sadd.s32 1, %s789_s14 }
   0x7   : > { %s71_s20 = ssub.s32 %s793_s15, %s847_s18  ;;  %p84_p0 = scmp.ne.s32.totalorder %s789_s14, %s785_s13 }
   0x8   : > { %p72_p1 = scmp.eq.s32.totalorder %s71_s20, 0  ;;  %p85_p2 = scmp.eq.s32.totalorder %s843_s16, 1 }
   0x9   : > { %p90_p3 = scmp.ne.s32.totalorder %s785_s13, %s781_s12  ;;  %p91_p4 = scmp.eq.s32.totalorder %s627_s17, 1 }
   0xa   : > { %s858_s21 = scalar_select %p72_p1, %s789_s14, %s74_s19  }
   0xb   : > { %p860_p5 = por %p85_p2, %p84_p0  ;;  %p864_p6 = por %p91_p4, %p90_p3 }
   0xc   : > { %p630_p7 = scmp.ge.s32.totalorder %s793_s15, 1  ;;  %p145_p8 = scmp.lt.s32.totalorder %s793_s15, 3 }
   0xe   : > { %p146_p9 = pnand %p630_p7, %p145_p8 }
   0xf   : > { %p173_p10 = scmp.lt.s32.totalorder (!%p146_p9), %s843_s16, 1  ;;  %s939_s4 = sand.u32 (!%p146_p9), 1, %s785_s13  }
  0x10   : > { %149 = sbr.rel (%p146_p9) target bundleno = 254 (0xfe), region = 28  ;;  %s631_s5 = sshll.u32 (!%p146_p9), %s939_s4, 3 }
  0x11   : > { %s642_s6 = sshll.u32 (!%p146_p9), %s843_s16, 3  ;;  %s165_s19 = scalar_lea.vmem (!%p146_p9), [#allocation2], %s631_s5 }
  0x12   : > { %s516_s9 = scalar_lea.hbm (!%p146_p9), %s1005_s2, %s642_s6  ;;  %s530_s17 = scalar_lea.hbm (!%p146_p9), %s1006_s3, %s642_s6 }
  0x13   : > { %s518_s20 = sshll.u32 (!%p146_p9), %s165_s19, 4  ;;  %s534_s26 = sshll.u32 (!%p146_p9), %s530_s17, 4  ;;  %s519_s20 = int_to_ptr.vmem [resolvable:$true] %s518_s20  ;;  %s956_s26 = int_to_ptr.hbm [resolvable:$true] %s534_s26 }
  0x14   : > { %s501_s27 = scalar_lea.sflag (!%p146_p9), [#allocation3], %s939_s4  ;;  %s719_s6 = scalar_lea.hbm (!%p146_p9), %s1005_s2, 16 }
  0x15   : > { %v795_v0 = vmov 0   ;;  %s174_s24 = scalar_select %p173_p10, %s843_s16, 1  ;;  %v698_v2 = vld [vmem:[%s1004_s1] ss:$0 sm:$0xff]  ;;  %v796_v16 = vmov 683565275  }
  0x16   : > { %697 = vset.pattern.permute.xlu0 %v795_v0  ;;  %v797_v18 = vmov 2475754826   ;;  %v798_v21 = vmov 2131351028   ;;  %v799_v24 = vmov 2102212464  }
  0x17   : > { %s633_s25 = sshll.u32 %s174_s24, 3  ;;  %v800_v27 = vmov 920167782   ;;  %v801_v30 = vmov 1326507024   ;;  %s520_s16 = sshll.u32 %s516_s9, 4  ;;  %s521_s16 = int_to_ptr.hbm [resolvable:$true] %s520_s16 }
  0x18   : > { %s176_s28 = scalar_lea.vmem %s1003_s0, %s633_s25  ;;  %s949_s24 = scalar_lea.vmem [#allocation4], %s631_s5 }
  0x19   : > { %v177_v1 = vld [vmem:[%s176_s28] sm:$0xff]  ;;  %s532_s25 = sshll.u32 %s949_s24, 4  ;;  %s713_s28 = sshra.s32 %s521_s16, 4  ;;  %s954_s25 = int_to_ptr.vmem [resolvable:$true] %s532_s25  ;;  %s714_s28 = int_to_ptr.hbm [resolvable:$true] %s713_s28 }
  0x1a   : > { %181 = vperm.xlu0 %697, %v177_v1   ;;  %s715_s29 = scalar_lea.hbm %s714_s28, 8  ;;  %p720_p0 = scmp.lt.s32.totalorder %s714_s28, %s1005_s2 }
  0x1b   : > { %p716_p11 = scmp.ne.s32.totalorder %s714_s28, %s715_s29  ;;  %p721_p1 = scmp.lt.s32.totalorder %s719_s6, %s715_s29 }
  0x1d   : > { %p717_p12 = pnand %p716_p11, %p860_p5  ;;  %p722_p2 = por %p721_p1, %p720_p0 }
  0x1f   : > { %p718_p13 = pneg %p717_p12 }
  0x21   : > { %p723_p3 = pnand %p722_p2, %p718_p13 }
  0x8c   : > { %v182_v3 = vpop.permute.xlu0 %181 }
  0x8d   : > { %v879_v4 = vmul.f32 %v698_v2, %v182_v3 }
  0x8f   : > { %v191_v5 = vand.u32 2139095040, %v879_v4  ;;  %v188_v8 = vand.u32 2147483647, %v879_v4  ;;  %vm190_vm12 = vcmp.lt.s32.totalorder %v879_v4, 0 }
  0x91   : > { %v192_v6 = vshrl.u32 %v191_v5, 23  ;;  %v195_v10 = vand.u32 8388607, %v188_v8  ;;  %vm189_vm13 = vcmp.le.f32.partialorder %v188_v8, 0.7853982 }
  0x93   : > { %v634_v7 = vadd.s32 4294967169, %v192_v6  ;;  %v196_v14 = vor.u32 8388608, %v195_v10 }
  0x95   : > { %v198_v9 = vadd.s32 1, %v634_v7  ;;  %v896_v37 = vshll.u32 %v196_v14, 8 }
  0x97   : > { %vm199_vm0 = vcmp.gt.s32.totalorder %v198_v9, 0  ;;  %v237_v46 = vand.u32 65535, %v896_v37  ;;  %v238_v47 = vshrl.u32 %v896_v37, 16 }
  0x98   : > { %v200_v11 = vsel %vm199_vm0, %v198_v9, 0 }
  0x99   : > { %v202_v12 = vand.u32 31, %v200_v11  ;;  %v887_v15 = vshrl.u32 %v200_v11, 5 }
  0x9b   : > { %v885_v13 = vsub.s32 32, %v202_v12  ;;  %v205_v17 = vshll.u32 %v796_v16, %v202_v12  ;;  %v208_v19 = vshll.u32 %v797_v18, %v202_v12  ;;  %v211_v23 = vshll.u32 %v798_v21, %v202_v12 }
  0x9c   : > { %v214_v26 = vshll.u32 %v799_v24, %v202_v12  ;;  %v217_v29 = vshll.u32 %v800_v27, %v202_v12  ;;  %vm220_vm1 = vcmp.lt.s32.totalorder %v887_v15, 1  ;;  %vm223_vm2 = vcmp.lt.s32.totalorder %v887_v15, 4 }
  0x9d   : > { %v206_v20 = vshrl.u32 %v797_v18, %v885_v13  ;;  %v209_v22 = vshrl.u32 %v798_v21, %v885_v13  ;;  %v212_v25 = vshrl.u32 %v799_v24, %v885_v13  ;;  %v215_v28 = vshrl.u32 %v800_v27, %v885_v13 }
  0x9e   : > { %v218_v31 = vshrl.u32 %v801_v30, %v885_v13  ;;  %vm222_vm3 = vcmp.lt.s32.totalorder %v887_v15, 3  ;;  %vm221_vm4 = vcmp.lt.s32.totalorder %v887_v15, 2  ;;  %v204_v11 = vshrl.u32 %v796_v16, %v885_v13 }
  0x9f   : > { %v207_v32 = vor.u32 %v206_v20, %v205_v17  ;;  %v210_v33 = vor.u32 %v209_v22, %v208_v19  ;;  %v213_v34 = vor.u32 %v212_v25, %v211_v23  ;;  %v216_v35 = vor.u32 %v215_v28, %v214_v26 }
  0xa0   : > { %v219_v36 = vor.u32 %v218_v31, %v217_v29 }
  0xa1   : > { %v228_v38 = vsel %vm220_vm1, %v207_v32, %v210_v33  ;;  %v232_v39 = vsel %vm220_vm1, %v210_v33, %v213_v34  ;;  %v229_v40 = vsel %vm223_vm2, %v216_v35, 920167782  ;;  %v225_v7 = vsel %vm223_vm2, %v213_v34, 2102212464 }
  0xa2   : > { %v233_v41 = vsel %vm223_vm2, %v219_v36, 1326507024  ;;  %v230_v42 = vsel %vm222_vm3, %v213_v34, %v229_v40  ;;  %v224_v20 = vsel %vm220_vm1, %v204_v11, %v207_v32  ;;  %v226_v21 = vsel %vm222_vm3, %v210_v33, %v225_v7 }
  0xa3   : > { %v234_v43 = vsel %vm222_vm3, %v216_v35, %v233_v41  ;;  %v231_v44 = vsel %vm221_vm4, %v228_v38, %v230_v42  ;;  %v227_v13 = vsel %vm221_vm4, %v224_v20, %v226_v21  ;;  %vm342_vm1 = vcmask 261120  }
  0xa4   : > { %v235_v45 = vsel %vm221_vm4, %v232_v39, %v234_v43  ;;  %v261_v50 = vand.u32 65535, %v231_v44  ;;  %v262_v51 = vshrl.u32 %v231_v44, 16  ;;  %v281_v28 = vmul.u32 %v896_v37, %v227_v13 }
  0xa5   : > { %v239_v48 = vand.u32 65535, %v235_v45  ;;  %v240_v49 = vshrl.u32 %v235_v45, 16 }
  0xa6   : > { %v264_v54 = vmul.u32 %v262_v51, %v237_v46  ;;  %v265_v55 = vmul.u32 %v261_v50, %v238_v47  ;;  %v263_v59 = vmul.u32 %v261_v50, %v237_v46  ;;  %v266_v63 = vmul.u32 %v262_v51, %v238_v47 }
  0xa7   : > { %v242_v52 = vmul.u32 %v240_v49, %v237_v46  ;;  %v243_v53 = vmul.u32 %v239_v48, %v238_v47  ;;  %v241_v56 = vmul.u32 %v239_v48, %v237_v46  ;;  %v244_v58 = vmul.u32 %v240_v49, %v238_v47 }
  0xa8   : > { %v267_v60 = vshll.u32 %v264_v54, 16  ;;  %v269_v2 = vshll.u32 %v265_v55, 16  ;;  %v268_v18 = vshrl.u32 %v264_v54, 16  ;;  %v270_v24 = vshrl.u32 %v265_v55, 16 }
  0xa9   : > { %v245_v57 = vshll.u32 %v242_v52, 16  ;;  %v247_v61 = vshll.u32 %v243_v53, 16  ;;  %v246_v12 = vshrl.u32 %v242_v52, 16  ;;  %v248_v22 = vshrl.u32 %v243_v53, 16 }
  0xaa   : > { %vm271_vm6 = vc.u32 %v263_v59, %v267_v60  ;;  %v273_v3 = vadd.s32 %v267_v60, %v263_v59 }
  0xab   : > { %vm249_vm5 = vc.u32 %v241_v56, %v245_v57  ;;  %v251_v62 = vadd.s32 %v245_v57, %v241_v56  ;;  %v272_v6 = vsel %vm271_vm6, 1, %v795_v0 }
  0xac   : > { %v250_v1 = vsel %vm249_vm5, 1, %v795_v0  ;;  %v274_v10 = vadd.s32 %v272_v6, %v266_v63  ;;  %vm275_vm8 = vc.u32 %v273_v3, %v269_v2  ;;  %v277_v27 = vadd.s32 %v273_v3, %v269_v2 }
  0xad   : > { %v252_v5 = vadd.s32 %v250_v1, %v244_v58  ;;  %vm253_vm7 = vc.u32 %v251_v62, %v247_v61  ;;  %v276_v17 = vsel %vm275_vm8, 1, %v795_v0  ;;  %vm331_vm5 = vweird.f32 %v879_v4 }
  0xae   : > { %v254_v9 = vsel %vm253_vm7, 1, %v795_v0  ;;  %v278_v19 = vadd.s32 %v276_v17, %v274_v10 }
  0xaf   : > { %v256_v14 = vadd.s32 %v254_v9, %v252_v5 }
  0xb0   : > { %v279_v25 = vadd.s32 %v278_v19, %v268_v18 }
  0xb1   : > { %v257_v23 = vadd.s32 %v256_v14, %v246_v12 }
  0xb2   : > { %v280_v16 = vadd.s32 %v279_v25, %v270_v24 }
  0xb3   : > { %v258_v26 = vadd.s32 %v257_v23, %v248_v22 }
  0xb4   : > { %v284_v0 = vadd.s32 1, %v280_v16 }
  0xb5   : > { %vm283_vm9 = vc.u32 %v258_v26, %v277_v27  ;;  %v282_v15 = vadd.s32 %v277_v27, %v258_v26 }
  0xb6   : > { %v285_v29 = vsel %vm283_vm9, %v284_v0, %v280_v16 }
  0xb7   : > { %v286_v30 = vadd.s32 %v285_v29, %v281_v28 }
  0xb9   : > { %v287_v31 = vadd.s32 536870912, %v286_v30 }
  0xbb   : > { %v288_v32 = vshrl.u32 %v287_v31, 30 }
  0xbd   : > { %v289_v34 = vshll.u32 %v288_v32, 30  ;;  %v312_v53 = vsub.s32 4, %v288_v32 }
  0xbf   : > { %v290_v33 = vsub.s32 %v286_v30, %v289_v34  ;;  %v313_v58 = vsel %vm190_vm12, %v312_v53, %v288_v32 }
  0xc0   : > { %v315_v61 = vsel %vm189_vm13, 0, %v313_v58 }
  0xc1   : > { %vm291_vm10 = vcmp.lt.s32.totalorder %v290_v33, 0  ;;  %v292_v35 = vsub.s32 0, %v290_v33  ;;  %v488_v8 = vadd.s32 3, %v315_v61  ;;  %v332_v9 = vand.u32 3, %v315_v61 }
  0xc3   : > { %v293_v36 = vsel %vm291_vm10, %v292_v35, %v290_v33  ;;  %v489_v10 = vand.u32 3, %v488_v8  ;;  %vm333_vm14 = vcmp.lt.s32.totalorder %v332_v9, 2  ;;  %vm334_vm15 = vcmp.eq.s32.totalorder %v332_v9, 0 }
  0xc4   : > { %v294_v38 = vclz %v293_v36  ;;  %vm337_vm0 = vcmp.eq.s32.totalorder %v332_v9, 2 }
  0xc5   : > { %vm490_vm2 = vcmp.lt.s32.totalorder %v489_v10, 2  ;;  %vm491_vm3 = vcmp.eq.s32.totalorder %v489_v10, 0  ;;  %vm494_vm4 = vcmp.eq.s32.totalorder %v489_v10, 2 }
  0xc6   : > { %v635_v39 = vadd.s32 4294967294, %v294_v38 }
  0xc8   : > { %vm636_vm11 = vcmp.lt.s32.totalorder %v635_v39, 0 }
  0xc9   : > { %v297_v40 = vsel %vm636_vm11, 0, %v635_v39 }
  0xca   : > { %v298_v41 = vsub.s32 32, %v297_v40  ;;  %v302_v42 = vsub.s32 4294967266, %v297_v40  ;;  %v299_v43 = vshll.u32 %v290_v33, %v297_v40 }
  0xcc   : > { %v300_v44 = vshrl.u32 %v282_v15, %v298_v41  ;;  %v303_v45 = vadd.s32 127, %v302_v42 }
  0xce   : > { %v301_v37 = vor.u32 %v300_v44, %v299_v43  ;;  %v304_v46 = vshll.u32 %v303_v45, 23 }
  0xd0   : > { %v305_v47 = vor.u32 4788187, %v304_v46  ;;  %v308_v49 = vcvt.s32.f32 %v301_v37 }
  0xd2   : > { %v306_v48 = vand.u32 2147483647, %v305_v47 }
  0xd4   : > { %v309_v50 = vmul.f32 %v308_v49, %v306_v48 }
  0xd6   : > { %v310_v51 = vxor.u32 2147483648, %v309_v50 }
  0xd8   : > { %v311_v52 = vsel %vm190_vm12, %v310_v51, %v309_v50 }
  0xd9   : > { %v314_v54 = vsel %vm189_vm13, %v879_v4, %v311_v52 }
  0xda   : > { %v316_v55 = vmul.f32 %v314_v54, %v314_v54 }
  0xdc   : > { %v317_v56 = vmul.f32 -0.001358992, %v316_v55  ;;  %v324_v57 = vmul.f32 -0.00019511016, %v316_v55 }
  0xde   : > { %v318_v59 = vadd.f32 0.041655596, %v317_v56  ;;  %v325_v60 = vadd.f32 0.008332121, %v324_v57 }
  0xe0   : > { %v319_v62 = vmul.f32 %v318_v59, %v316_v55  ;;  %v326_v63 = vmul.f32 %v325_v60, %v316_v55 }
  0xe2   : > { %v320_v1 = vadd.f32 -0.4999988, %v319_v62  ;;  %v327_v2 = vadd.f32 -0.16666654, %v326_v63 }
  0xe4   : > { %v321_v3 = vmul.f32 %v320_v1, %v316_v55  ;;  %v328_v5 = vmul.f32 %v327_v2, %v316_v55 }
  0xe6   : > { %v322_v6 = vadd.f32 1.0, %v321_v3  ;;  %v329_v7 = vadd.f32 1.0, %v328_v5 }
  0xe8   : > { %v330_v11 = vmul.f32 %v329_v7, %v314_v54  ;;  %v338_v12 = vxor.u32 2147483648, %v322_v6 }
  0xea   : > { %v335_v14 = vxor.u32 2147483648, %v330_v11  ;;  %v339_v18 = vsel %vm337_vm0, %v338_v12, %v330_v11  ;;  %v496_v20 = vsel %vm494_vm4, %v338_v12, %v330_v11 }
  0xec   : > { %v336_v17 = vsel %vm334_vm15, %v322_v6, %v335_v14  ;;  %v493_v19 = vsel %vm491_vm3, %v322_v6, %v335_v14 }
  0xed   : > { %v340_v21 = vsel %vm333_vm14, %v336_v17, %v339_v18  ;;  %v497_v22 = vsel %vm490_vm2, %v493_v19, %v496_v20 }
  0xee   : > { %v341_v23 = vsel %vm331_vm5, nan, %v340_v21  ;;  %v498_v24 = vsel %vm331_vm5, nan, %v497_v22 }
  0xef   : > { %343 = vst.msk [vmem:[%s165_s19] sm:$0xff] %vm342_vm1, %v341_v23 }
  0xf0   : > { %726 = shalt.err (!%p723_p3)
}
  0xf1   : > { %646 = dma.vmem_to_hbm [thread:$0]  (%p860_p5), %s519_s20, 128, %s521_s16, %s501_s27   ;;  %499 = vst.msk [vmem:[%s949_s24] sm:$0xff] %vm342_vm1, %v498_v24 }
  0xf2   : > { %s506_s9 = scalar_lea.sflag [#allocation5], %s939_s4  ;;  %s741_s10 = sshra.s32 %s956_s26, 4  ;;  %s742_s10 = int_to_ptr.hbm [resolvable:$true] %s741_s10 }
  0xf3   : > { %s743_s11 = scalar_lea.hbm %s742_s10, 8  ;;  %s747_s28 = scalar_lea.hbm %s1006_s3, 16 }
  0xf4   : > { %p744_p4 = scmp.ne.s32.totalorder %s742_s10, %s743_s11  ;;  %p748_p9 = scmp.lt.s32.totalorder %s742_s10, %s1006_s3 }
  0xf5   : > { %p749_p10 = scmp.lt.s32.totalorder %s747_s28, %s743_s11 }
  0xf6   : > { %p745_p7 = pnand %p744_p4, %p860_p5 }
  0xf7   : > { %p750_p11 = por %p749_p10, %p748_p9 }
  0xf8   : > { %p746_p8 = pneg %p745_p7 }
  0xfa   : > { %p751_p12 = pnand %p750_p11, %p746_p8 }
  0xfc   : > { %754 = shalt.err (!%p751_p12)
}
  0xfd   : > { %647 = dma.vmem_to_hbm [thread:$0]  (%p860_p5), %s954_s25, 128, %s956_s26, %s506_s9  }
  0xfe PF: > { %p657_p13 = scmp.ge.s32.totalorder %s793_s15, 2  ;;  %s546_s4 = sand.u32 1, %s781_s12  }
  0xff   : > { %s547_s20 = scalar_lea.sflag [#allocation3], %s546_s4 }
 0x100   : > { %p651_p0 = pnand %p657_p13, %p864_p6 }
 0x102   : > { %p652_p1 = pneg %p651_p0 }
 0x104   : > { %772 = dma.done.wait (%p652_p1), %s547_s20, 128  }
 0x105   : > { %774 = vsyncadd (%p652_p1), %s547_s20, 4294967168  ;;  %s557_s16 = scalar_lea.sflag [#allocation5], %s546_s4 }
 0x106   : > { %776 = dma.done.wait (%p652_p1), %s557_s16, 128  }
 0x107   : > { %778 = vsyncadd (%p652_p1), %s557_s16, 4294967168  ;;  %p17_p5 = scmp.ge.s32.totalorder %s847_s18, 4   ;;  %s1009_s12 = smov %s785_s13 }
 0x108   : > { %s1010_s13 = smov %s789_s14  ;;  %s1011_s14 = smov %s858_s21 }
 0x109   : > { %s1012_s15 = smov %s847_s18  ;;  %19 = sbr.rel (!%p17_p5) target bundleno = 5 (0x5), region = 80 }
 0x10e   :  { %563 = vsyncpa [#allocation3], 1 }
 0x10f   :  { %565 = vsyncpa [#allocation3 + $0x1], 1 }
 0x110   :  { %566 = vsyncpa [#allocation5], 1 }
 0x111   :  { %568 = vsyncpa [#allocation5 + $0x1], 1 }

</bundles_post_ra>
